<compile_context>
chip_gen: v7x
topology: tpu7x:2x2x1
jax: 0.10.0
libtpu: 0.0.40
codegen_flags: <defaults>
</compile_context>

<pallas_src>
import functools

import jax
import jax.numpy as jnp
from jax.experimental import pallas as pl
from jax.experimental.pallas import tpu as pltpu


def centernet_kernel(x_ref, wstem_ref, wheads_ref, bheads_ref, out_ref, *, num_classes):
    # x_ref      : (C+1, T) int8   rows 0..C-1 = pixel-128, row C = constant 1
    # wstem_ref  : (F, C+1) bf16   1/std, mean shift, +128 shift and stem bias folded in
    # wheads_ref : (K+4, F) bf16   fused [heatmap | wh | reg] 1x1-conv weight
    # bheads_ref : (K+4, 1) f32    fused head bias
    # out_ref    : (K+4, T) bf16   fused head output (sigmoid on heatmap rows)

    # upcast 8-bit pixels; values (-128..127 and the constant 1) are exact in bf16
    x = x_ref[...].astype(jnp.float32).astype(jnp.bfloat16)

    # --- synthetic backbone stem: 1x1 conv + ReLU (bias folded into const-1 row) ---
    # TODO(synk): real cfg/registry-built backbone (DLA / ResNet-FPN) not reproducible here.
    feat = jnp.dot(wstem_ref[...], x, preferred_element_type=jnp.float32)
    feat = jnp.maximum(feat, 0.0).astype(jnp.bfloat16)

    # --- fused CenterNet heads: one MXU pass over all K+4 output rows ---
    heads = jnp.dot(wheads_ref[...], feat, preferred_element_type=jnp.float32)
    heads = heads + bheads_ref[...]

    # sigmoid only on the heatmap rows; slice at row K (f32 sublane boundary for K=8),
    # then a single dense lane-wide store.
    hm = jax.nn.sigmoid(heads[:num_classes])
    out_ref[...] = jnp.concatenate([hm, heads[num_classes:]], axis=0).astype(out_ref.dtype)


def _choose_tile(hw, batch, tile_cap):
    """Lane-aligned spatial tile + padded HW it evenly divides.

    Keeps each grid step large enough to amortize the ~0.35us per-step pipeline
    overhead, guarantees >= 2 total grid steps (so both v7x TensorCores run),
    and clamps the tile so the per-step VMEM footprint stays under a v7x-safe
    budget (64 MiB physical).
    """
    tile_cap = min(max(tile_cap, 128), 32768)          # v7x VMEM-safe upper bound
    tile_cap -= tile_cap % 128
    hw_lane = ((hw + 127) // 128) * 128                # lane-align
    tile = min(tile_cap, hw_lane)
    # guarantee at least 2 parallel grid steps total (v7x: 2 TCs per chip)
    while batch * (-(-hw_lane // tile)) < 2 and tile > 128:
        tile = ((tile // 2 + 127) // 128) * 128
    hw_pad = (-(-hw_lane // tile)) * tile
    return tile, hw_pad


def centernet_forward(x_nchw, params, *, tile_cap=16384):
    """CenterNetDetector inference forward.

    x_nchw: (B, C, H, W) uint8 raw pixels (detectron2 feeds uint8 image tensors).
    Returns (heatmap, wh, reg) in NCHW, bfloat16.
    """
    if x_nchw.dtype != jnp.uint8:
        x_nchw = jnp.clip(jnp.round(x_nchw), 0, 255).astype(jnp.uint8)
    B, C, H, W = x_nchw.shape
    F = params["w_backbone"].shape[1]
    K = params["w_hm"].shape[1]
    HW = H * W

    # ---- fold preprocess (x-mean)/std, the +128 int8 shift, and the stem bias
    #      into ONE augmented stem weight: feat = W_aug @ [x-128 ; 1] ----
    mean = params["pixel_mean"].reshape(C).astype(jnp.float32)
    std = params["pixel_std"].reshape(C).astype(jnp.float32)
    inv_std = 1.0 / std
    w_b = params["w_backbone"].astype(jnp.float32)                 # (C, F)
    w_scaled = w_b * inv_std[:, None]                              # (C, F) == W / std
    b_stem = params["b_backbone"] - (mean * inv_std) @ w_b         # (F,)  mean fold
    b_fold = b_stem + 128.0 * jnp.sum(w_scaled, axis=0)            # (F,)  +128 shift fold
    w_stem_aug = jnp.concatenate([w_scaled, b_fold[None, :]], axis=0).T  # (F, C+1)
    w_stem_aug = w_stem_aug.astype(jnp.bfloat16)

    # ---- fuse heatmap / wh / reg heads into one matmul ----
    w_heads = jnp.concatenate(
        [params["w_hm"], params["w_wh"], params["w_reg"]], axis=1).T.astype(jnp.bfloat16)
    b_heads = jnp.concatenate(
        [params["b_hm"], params["b_wh"], params["b_reg"]]).reshape(K + 4, 1).astype(jnp.float32)

    # ---- 8-bit pixel planes + constant-1 plane (bias fold); spatial on lanes ----
    # TODO(synk): in a real pipeline the shifted-int8 + ones layout would be produced
    # once by the dataloader rather than in this wrapper.
    x_shift = (x_nchw.astype(jnp.int32) - 128).astype(jnp.int8).reshape(B, C, HW)
    ones = jnp.ones((B, 1, HW), jnp.int8)
    x_aug = jnp.concatenate([x_shift, ones], axis=1)               # (B, C+1, HW) int8

    tile, hw_pad = _choose_tile(HW, B, tile_cap)
    if hw_pad != HW:
        x_aug = jnp.pad(x_aug, ((0, 0), (0, 0), (0, hw_pad - HW)))
    grid = (B, hw_pad // tile)

    # per-step VMEM: 2x in (32 B/lane, int8 sublane-padded) + 2x out (32 B/lane bf16)
    # + f32/bf16 intermediates (~600 B/lane)  ->  ~<768*tile bytes; headroom x2,
    # clamped well under v7x's 64 MiB physical VMEM.
    vmem_limit = int(min(max(2 * 768 * tile, 32 << 20), 56 << 20))

    out = pl.pallas_call(
        functools.partial(centernet_kernel, num_classes=K),
        out_shape=jax.ShapeDtypeStruct((B, K + 4, hw_pad), jnp.bfloat16),
        grid_spec=pltpu.PrefetchScalarGridSpec(
            num_scalar_prefetch=0,
            grid=grid,
            in_specs=[
                pl.BlockSpec((None, C + 1, tile), lambda b, i: (b, 0, i)),  # pixels
                pl.BlockSpec((F, C + 1), lambda b, i: (0, 0)),              # stem W (aug)
                pl.BlockSpec((K + 4, F), lambda b, i: (0, 0)),              # fused head W
                pl.BlockSpec((K + 4, 1), lambda b, i: (0, 0)),              # fused head b
            ],
            out_specs=pl.BlockSpec((None, K + 4, tile), lambda b, i: (b, 0, i)),
        ),
        compiler_params=pltpu.CompilerParams(
            dimension_semantics=("parallel", "parallel"),
            vmem_limit_bytes=vmem_limit,
        ),
    )(x_aug, w_stem_aug, w_heads, b_heads)

    out = out[..., :HW].reshape(B, K + 4, H, W)        # already NCHW — no transpose
    return out[:, :K], out[:, K:K + 2], out[:, K + 2:]


def centernet_reference(x_nchw_u8, params):
    """Pure-JAX f32 reference (unfused, explicit normalization) for correctness."""
    B, C, H, W = x_nchw_u8.shape
    x = x_nchw_u8.astype(jnp.float32)
    mean = params["pixel_mean"].reshape(1, 1, C)
    std = params["pixel_std"].reshape(1, 1, C)
    xf = jnp.transpose(x, (0, 2, 3, 1)).reshape(B, H * W, C)
    xn = (xf - mean) / std
    feat = jnp.maximum(xn @ params["w_backbone"] + params["b_backbone"], 0.0)
    hm = jax.nn.sigmoid(feat @ params["w_hm"] + params["b_hm"])
    wh = feat @ params["w_wh"] + params["b_wh"]
    reg = feat @ params["w_reg"] + params["b_reg"]
    to_nchw = lambda a: jnp.transpose(a.reshape(B, H, W, -1), (0, 3, 1, 2))
    return to_nchw(hm), to_nchw(wh), to_nchw(reg)


def make_params(key, C=3, F=64, K=8):
    ks = jax.random.split(key, 4)
    return {
        # detectron2-style pixel stats (deterministic constants)
        "pixel_mean": jnp.array([103.53, 116.28, 123.675], dtype=jnp.float32)[:C],
        "pixel_std": jnp.array([57.375, 57.12, 58.395], dtype=jnp.float32)[:C],
        "w_backbone": 0.05 * jax.random.normal(ks[0], (C, F), jnp.float32),
        "b_backbone": jnp.zeros((F,), jnp.float32),
        "w_hm": 0.05 * jax.random.normal(ks[1], (F, K), jnp.float32),
        # CenterNet heatmap bias prior
        "b_hm": jnp.full((K,), -2.19, jnp.float32),
        "w_wh": 0.05 * jax.random.normal(ks[2], (F, 2), jnp.float32),
        "b_wh": jnp.zeros((2,), jnp.float32),
        "w_reg": 0.05 * jax.random.normal(ks[3], (F, 2), jnp.float32),
        "b_reg": jnp.zeros((2,), jnp.float32),
    }


if __name__ == "__main__":
    key = jax.random.PRNGKey(0)
    k_img, k_par = jax.random.split(key)

    B, C, H, W = 2, 3, 16, 16      # small NCHW uint8 image batch
    x = jax.random.randint(k_img, (B, C, H, W), 0, 256, dtype=jnp.int32).astype(jnp.uint8)
    params = make_params(k_par, C=C, F=64, K=8)

    hm, wh, reg = centernet_forward(x, params)
    jax.block_until_ready((hm, wh, reg))

    assert hm.shape == (B, 8, H, W) and hm.dtype == jnp.bfloat16
    assert wh.shape == (B, 2, H, W)
    assert reg.shape == (B, 2, H, W)
    assert bool(jnp.all((hm >= 0.0) & (hm <= 1.0)))

    hm_r, wh_r, reg_r = centernet_reference(x, params)
    # tolerance loosened vs f32 version: bf16 weights/activations/output rounding
    for a, b in ((hm, hm_r), (wh, wh_r), (reg, reg_r)):
        af = a.astype(jnp.float32)
        assert bool(jnp.allclose(af, b, rtol=3e-2, atol=3e-2)), float(jnp.max(jnp.abs(af - b)))

    print("KERNEL_OK")
</pallas_src>

<mosaic_0001>
module attributes {stable_mosaic.version = 11 : i64} {
  func.func @centernet_kernel(%arg0: i32, %arg1: i32, %arg2: memref<1x4x256xi8, #tpu.memory_space<vmem>>, %arg3: memref<64x4xbf16, #tpu.memory_space<vmem>>, %arg4: memref<12x64xbf16, #tpu.memory_space<vmem>>, %arg5: memref<12x1xf32, #tpu.memory_space<vmem>>, %arg6: memref<1x12x256xbf16, #tpu.memory_space<vmem>>) attributes {dimension_semantics = [#tpu.dimension_semantics<parallel>, #tpu.dimension_semantics<parallel>], iteration_bounds = array<i64: 2, 1>, scalar_prefetch = 0 : i64, scratch_operands = 0 : i64, tpu.core_type = #tpu.core_type<tc>, window_params = [{transform_indices = @transform_0, window_bounds = array<i64: 1, 4, 256>}, {pipeline_mode = #tpu.pipeline_mode<synchronous>, transform_indices = @transform_1, window_bounds = array<i64: 64, 4>}, {pipeline_mode = #tpu.pipeline_mode<synchronous>, transform_indices = @transform_2, window_bounds = array<i64: 12, 64>}, {pipeline_mode = #tpu.pipeline_mode<synchronous>, transform_indices = @transform_3, window_bounds = array<i64: 12, 1>}, {transform_indices = @transform_4, window_bounds = array<i64: 1, 12, 256>}]} {
    %c0 = arith.constant 0 : index
    %c0_0 = arith.constant 0 : index
    %c0_1 = arith.constant 0 : index
    %0 = vector.load %arg2[%c0, %c0_0, %c0_1] : memref<1x4x256xi8, #tpu.memory_space<vmem>>, vector<1x4x256xi8>
    %1 = vector.shape_cast %0 : vector<1x4x256xi8> to vector<4x256xi8>
    %2 = arith.sitofp %1 : vector<4x256xi8> to vector<4x256xf32>
    %3 = arith.truncf %2 : vector<4x256xf32> to vector<4x256xbf16>
    %c0_2 = arith.constant 0 : index
    %c0_3 = arith.constant 0 : index
    %4 = vector.load %arg3[%c0_2, %c0_3] : memref<64x4xbf16, #tpu.memory_space<vmem>>, vector<64x4xbf16>
    %cst = arith.constant dense<0.000000e+00> : vector<64x256xf32>
    %5 = tpu.matmul %4, %3, %cst {dimension_numbers = #tpu.dot_dimension_numbers<[1], [0], [0], [1], [0, 0, 1, 1], [], []>} : vector<64x4xbf16>, vector<4x256xbf16>, vector<64x256xf32> -> vector<64x256xf32>
    %cst_4 = arith.constant 0.000000e+00 : f32
    %6 = vector.broadcast %cst_4 : f32 to vector<64x256xf32>
    %7 = arith.maximumf %5, %6 : vector<64x256xf32>
    %8 = arith.truncf %7 : vector<64x256xf32> to vector<64x256xbf16>
    %c0_5 = arith.constant 0 : index
    %c0_6 = arith.constant 0 : index
    %9 = vector.load %arg4[%c0_5, %c0_6] : memref<12x64xbf16, #tpu.memory_space<vmem>>, vector<12x64xbf16>
    %cst_7 = arith.constant dense<0.000000e+00> : vector<12x256xf32>
    %10 = tpu.matmul %9, %8, %cst_7 {dimension_numbers = #tpu.dot_dimension_numbers<[1], [0], [0], [1], [0, 0, 1, 1], [], []>} : vector<12x64xbf16>, vector<64x256xbf16>, vector<12x256xf32> -> vector<12x256xf32>
    %c0_8 = arith.constant 0 : index
    %c0_9 = arith.constant 0 : index
    %11 = vector.load %arg5[%c0_8, %c0_9] : memref<12x1xf32, #tpu.memory_space<vmem>>, vector<12x1xf32>
    %12 = vector.broadcast %11 : vector<12x1xf32> to vector<12x256xf32>
    %13 = arith.addf %10, %12 : vector<12x256xf32>
    %14 = vector.extract_strided_slice %13 {offsets = [0, 0], sizes = [8, 256], strides = [1, 1]} : vector<12x256xf32> to vector<8x256xf32>
    %15 = arith.negf %14 : vector<8x256xf32>
    %16 = math.exp %15 : vector<8x256xf32>
    %cst_10 = arith.constant 1.000000e+00 : f32
    %17 = vector.broadcast %cst_10 : f32 to vector<8x256xf32>
    %18 = arith.addf %17, %16 : vector<8x256xf32>
    %19 = arith.divf %17, %18 : vector<8x256xf32>
    %20 = vector.extract_strided_slice %13 {offsets = [8, 0], sizes = [4, 256], strides = [1, 1]} : vector<12x256xf32> to vector<4x256xf32>
    %21 = tpu.concatenate %19, %20 in 0 : vector<8x256xf32>, vector<4x256xf32> -> vector<12x256xf32>
    %22 = arith.truncf %21 : vector<12x256xf32> to vector<12x256xbf16>
    %c0_11 = arith.constant 0 : index
    %c0_12 = arith.constant 0 : index
    %c0_13 = arith.constant 0 : index
    %23 = vector.load %arg6[%c0_11, %c0_12, %c0_13] : memref<1x12x256xbf16, #tpu.memory_space<vmem>>, vector<1x12x256xbf16>
    %24 = vector.shape_cast %23 : vector<1x12x256xbf16> to vector<12x256xbf16>
    %25 = vector.shape_cast %22 : vector<12x256xbf16> to vector<1x12x256xbf16>
    tpu.vector_store %arg6[%c0_11, %c0_12, %c0_13], %25 {strides = array<i32>} : memref<1x12x256xbf16, #tpu.memory_space<vmem>>, vector<1x12x256xbf16>,
    return
  }
  func.func @transform_0(%arg0: i32, %arg1: i32) -> (i32, i32, i32) {
    %c0_i32 = arith.constant 0 : i32
    %c0_i32_0 = arith.constant 0 : i32
    return %arg0, %c0_i32, %arg1 : i32, i32, i32
  }
  func.func @transform_1(%arg0: i32, %arg1: i32) -> (i32, i32) {
    %c0_i32 = arith.constant 0 : i32
    %c0_i32_0 = arith.constant 0 : i32
    %c0_i32_1 = arith.constant 0 : i32
    return %c0_i32, %c0_i32_0 : i32, i32
  }
  func.func @transform_2(%arg0: i32, %arg1: i32) -> (i32, i32) {
    %c0_i32 = arith.constant 0 : i32
    %c0_i32_0 = arith.constant 0 : i32
    %c0_i32_1 = arith.constant 0 : i32
    return %c0_i32, %c0_i32_0 : i32, i32
  }
  func.func @transform_3(%arg0: i32, %arg1: i32) -> (i32, i32) {
    %c0_i32 = arith.constant 0 : i32
    %c0_i32_0 = arith.constant 0 : i32
    %c0_i32_1 = arith.constant 0 : i32
    return %c0_i32, %c0_i32_0 : i32, i32
  }
  func.func @transform_4(%arg0: i32, %arg1: i32) -> (i32, i32, i32) {
    %c0_i32 = arith.constant 0 : i32
    %c0_i32_0 = arith.constant 0 : i32
    return %arg0, %c0_i32, %arg1 : i32, i32, i32
  }
}

</mosaic_0001>

<bundles_post_ra>
// kernel: tpu_custom_call.1
= control target key start
LH: loop header
LB: loop body
LE: loop exit
PB: predicated region body
PF: predicated region fallthrough
CT: control target
= control target key end

     0   :  { %s690_s15 = smov 0   ;;  %s692_s16 = smov 0   ;;  %s748_s0 = inlined_call_operand.vmem [shape: s8[2,4,256], index: 0, kind: input, shape index: {}]   ;;  %s749_s1 = inlined_call_operand.vmem [shape: bf16[64,4], index: 1, kind: input, shape index: {}]   ;;  %s750_s2 = inlined_call_operand.vmem [shape: bf16[12,64], index: 2, kind: input, shape index: {}]   ;;  %s751_s3 = inlined_call_operand.vmem [shape: f32[12,1], index: 3, kind: input, shape index: {}]   ;;  %s752_s4 = inlined_call_operand.vmem [shape: bf16[2,12,256], index: 4, kind: output, shape index: {}]  }
   0x1   :  { %s694_s17 = smov 0  }
   0x2 LB: > { %s26_s18 = sadd.s32 1, %s658_s16  ;;  %p574_p0 = scmp.ge.s32.totalorder %s662_s17, 1  ;;  %s662_s17 = sphi %s694_s17, %s14_s17   ;;  %s658_s16 = sphi %s692_s16, %s754_s16   ;;  %s654_s15 = sphi %s690_s15, %s753_s15  }
   0x3   : > { %p28_p1 = scmp.ge.s32.totalorder %s26_s18, 2  ;;  %p182_p2 = scmp.lt.s32.totalorder %s662_s17, 3 }
   0x5   : > { %s756_s18 = smov (%p28_p1, %s26_s18), 0  ;;  %p183_p3 = pnand %p574_p0, %p182_p2 }
   0x6   : > { %p216_p4 = scmp.lt.s32.totalorder (!%p183_p3), %s654_s15, 1  ;;  %v664_v0 = vmov (!%p183_p3), 0   ;;  %vm290_vm0 = vcmask (!%p183_p3), 1041408   ;;  %v627_v6 = vld [vmem:[%s749_s1] sm:$0xff] (!%p183_p3)   ;;  %vm277_vm1 = vcmask (!%p183_p3), 31744   ;;  %v628_v7 = vld [vmem:[%s749_s1 + $0x8] sm:$0xff] (!%p183_p3)  }
   0x7   : > { %186 = sbr.rel (%p183_p3) target bundleno = 517 (0x205), region = 36  ;;  %329 = vmatprep.mubr.bf16.mxu0 (!%p183_p3), %v664_v0  ;;  %449 = vmatprep.mubr.bf16.mxu1 (!%p183_p3), %v664_v0  ;;  %v629_v8 = vld [vmem:[%s749_s1 + $0x10] sm:$0xff] (!%p183_p3)   ;;  %v630_v9 = vld [vmem:[%s749_s1 + $0x18] sm:$0xff] (!%p183_p3)   ;;  %v396_v10 = vld [vmem:[%s751_s3] sm:$0xff] (!%p183_p3)  ;;  %vm413_vm2 = vcmask (!%p183_p3), 523264  }
   0x8   : > { %626 = vset.pattern.permute.xlu0 (!%p183_p3), %v664_v0  ;;  %v397_v11 = vld [vmem:[%s751_s3 + $0x8] sm:$0xf] (!%p183_p3)  ;;  %v631_v52 = vld [vmem:[%s750_s2] sm:$0x3f] (!%p183_p3)  }
   0x9   : > { %400 = vperm.xlu0 (!%p183_p3), %626, %v396_v10  }
   0xd   : > { %405 = vperm.xlu0 (!%p183_p3), %626, %v397_v11  }
   0xe   : > { %s758_s15 = smov (!%p216_p4, %s654_s15), 1 }
   0xf   : > { %s575_s19 = sshll.u32 %s758_s15, 1  ;;  %s598_s11 = sshll.u32 %s758_s15, 4 }
  0x10   : > { %s222_s22 = scalar_lea.vmem %s748_s0, %s575_s19  ;;  %s232_s14 = scalar_lea.vmem %s752_s4, %s598_s11 }
  0x11   : > { %v578_v1 = vld.sshfl [vmem:[%s222_s22] sm:$0x5 pattern:$0x73625140] }
  0x12   : > { %v243_v2 = vunpack.c.l.s8.bf16 %v578_v1 }
  0x14   : > { %v584_v3 = vcombine.high %v243_v2, %v243_v2  ;;  %v583_v4 = vcombine.low %v243_v2, %v243_v2 }
  0x16   : > { %585 = vmatprep.subr.msk.bf16.mxu0 %vm290_vm0, %v584_v3  ;;  %v292_v5 = vsel %vm290_vm0, %v583_v4, 0 }
  0x17   : > { %298 = vmatpush1.bf16.msra.mxu0 %v292_v5 }
  0x1a   : > { %586 = vmatmul.mubr.msk.bf16.vlgmr.msra.gmra.mrb[0].mxu0 %vm277_vm1, %v627_v6 }
  0x1b   : > { %339 = vmatprep.mubr.bf16.mxu0 %v664_v0 }
  0x22   : > { %587 = vmatmul.mubr.msk.bf16.gmra.mrb[4].mxu0 %vm277_vm1, %v628_v7 }
  0x23   : > { %349 = vmatprep.mubr.bf16.mxu0 %v664_v0 }
  0x2a   : > { %588 = vmatmul.mubr.msk.bf16.gmra.mrb[8].mxu0 %vm277_vm1, %v629_v8 }
  0x2b   : > { %359 = vmatprep.mubr.bf16.mxu0 %v664_v0 }
  0x32   : > { %589 = vmatmul.mubr.msk.bf16.gmra.mrb[12].mxu0 %vm277_vm1, %v630_v9 }
  0x88   : > { %v401_v53 = vpop.permute.xlu0 %400 }
  0x8c   : > { %v406_v55 = vpop.permute.xlu0 %405 }
  0xed   : > { %v331_v12 = vpop.f32.mrb[0].mxu0 }
  0xee   : > { %v333_v13 = vpop.f32.mrb[1].mxu0  ;;  %v370_v15 = vmax.f32 %v331_v12, 0.0 }
  0xef   : > { %v335_v14 = vpop.f32.mrb[2].mxu0  ;;  %v371_v18 = vmax.f32 %v333_v13, 0.0 }
  0xf0   : > { %v372_v16 = vmax.f32 %v335_v14, 0.0  ;;  %v337_v17 = vpop.f32.mrb[3].mxu0 }
  0xf1   : > { %v373_v19 = vmax.f32 %v337_v17, 0.0 }
  0xf2   : > { %v386_v20 = vpack.c.bf16 %v372_v16, %v370_v15 }
  0xf3   : > { %v387_v21 = vpack.c.bf16 %v373_v19, %v371_v18 }
  0xf5   : > { %v341_v22 = vpop.f32.mrb[4].mxu0  ;;  %417 = vmatprep.subr.bf16.mxu1 %v387_v21 }
  0xf6   : > { %v343_v23 = vpop.f32.mrb[5].mxu0  ;;  %418 = vmatpush1.bf16.msra.mxu1 %v386_v20  ;;  %v374_v25 = vmax.f32 %v341_v22, 0.0 }
  0xf7   : > { %v345_v24 = vpop.f32.mrb[6].mxu0  ;;  %v375_v28 = vmax.f32 %v343_v23, 0.0 }
  0xf8   : > { %v376_v26 = vmax.f32 %v345_v24, 0.0  ;;  %v347_v27 = vpop.f32.mrb[7].mxu0 }
  0xf9   : > { %v377_v29 = vmax.f32 %v347_v27, 0.0 }
  0xfa   : > { %v388_v30 = vpack.c.bf16 %v376_v26, %v374_v25 }
  0xfb   : > { %v389_v31 = vpack.c.bf16 %v377_v29, %v375_v28 }
  0xfd   : > { %v351_v32 = vpop.f32.mrb[8].mxu0  ;;  %419 = vmatprep.subr.bf16.mxu1 %v389_v31 }
  0xfe   : > { %v353_v33 = vpop.f32.mrb[9].mxu0  ;;  %420 = vmatpush1.bf16.msra.mxu1 %v388_v30  ;;  %v378_v35 = vmax.f32 %v351_v32, 0.0 }
  0xff   : > { %v355_v34 = vpop.f32.mrb[10].mxu0  ;;  %v379_v38 = vmax.f32 %v353_v33, 0.0 }
 0x100   : > { %v380_v36 = vmax.f32 %v355_v34, 0.0  ;;  %v357_v37 = vpop.f32.mrb[11].mxu0 }
 0x101   : > { %v381_v39 = vmax.f32 %v357_v37, 0.0 }
 0x102   : > { %v390_v40 = vpack.c.bf16 %v380_v36, %v378_v35 }
 0x103   : > { %v391_v41 = vpack.c.bf16 %v381_v39, %v379_v38 }
 0x105   : > { %v361_v42 = vpop.f32.mrb[12].mxu0  ;;  %421 = vmatprep.subr.bf16.mxu1 %v391_v41 }
 0x106   : > { %v363_v43 = vpop.f32.mrb[13].mxu0  ;;  %422 = vmatpush1.bf16.msra.mxu1 %v390_v40  ;;  %v382_v45 = vmax.f32 %v361_v42, 0.0 }
 0x107   : > { %v365_v44 = vpop.f32.mrb[14].mxu0  ;;  %v383_v48 = vmax.f32 %v363_v43, 0.0 }
 0x108   : > { %v384_v46 = vmax.f32 %v365_v44, 0.0  ;;  %v367_v47 = vpop.f32.mrb[15].mxu0 }
 0x109   : > { %v385_v49 = vmax.f32 %v367_v47, 0.0 }
 0x10a   : > { %v392_v50 = vpack.c.bf16 %v384_v46, %v382_v45 }
 0x10b   : > { %v393_v51 = vpack.c.bf16 %v385_v49, %v383_v48 }
 0x10d   : > { %423 = vmatprep.subr.bf16.mxu1 %v393_v51 }
 0x10e   : > { %424 = vmatpush1.bf16.msra.mxu1 %v392_v50 }
 0x111   : > { %591 = vmatmul.mubr.msk.bf16.vlgmr.msra.gmra.mrb[0].mxu1 %vm413_vm2, %v631_v52 }
 0x1e4   : > { %v451_v54 = vpop.f32.mrb[0].mxu1 }
 0x1e5   : > { %v452_v56 = vadd.f32 %v451_v54, %v401_v53  ;;  %v453_v57 = vpop.f32.mrb[1].mxu1 }
 0x1e6   : > { %v454_v58 = vadd.f32 %v453_v57, %v401_v53  ;;  %v455_v59 = vpop.f32.mrb[2].mxu1 }
 0x1e7   : > { %v592_v60 = vmul.f32 -1.442695, %v452_v56  ;;  %v456_v61 = vadd.f32 %v455_v59, %v406_v55  ;;  %v457_v62 = vpop.f32.mrb[3].mxu1 }
 0x1e8   : > { %v593_v63 = vmul.f32 -1.442695, %v454_v58  ;;  %v458_v0 = vadd.f32 %v457_v62, %v406_v55 }
 0x1e9   : > { %632 = vpow2.f32 %v592_v60 }
 0x1ea   : > { %634 = vpow2.f32 %v593_v63  ;;  %v600_v1 = vpack.c.bf16 %v458_v0, %v456_v61 }
 0x1ec   : > { %485 = vst [vmem:[%s232_s14 + $0x8] sm:$0x33] %v600_v1 }
 0x1f3   : > { %v633_v2 = vpop.eup %632 }
 0x1f4   : > { %v635_v3 = vpop.eup %634  ;;  %v466_v4 = vadd.f32 1.0, %v633_v2 }
 0x1f5   : > { %v467_v5 = vadd.f32 1.0, %v635_v3 }
 0x1f6   : > { %636 = vrcp.f32 %v466_v4 }
 0x1f7   : > { %638 = vrcp.f32 %v467_v5 }
 0x200   : > { %v637_v6 = vpop.eup %636 }
 0x201   : > { %v639_v7 = vpop.eup %638 }
 0x202   : > { %v599_v8 = vpack.c.bf16 %v639_v7, %v637_v6 }
 0x204   : > { %484 = vst [vmem:[%s232_s14] sm:$0xff] %v599_v8 }
 0x205 PF: > { %s14_s17 = sadd.s32 1, %s662_s17   ;;  %s753_s15 = smov %s658_s16 }
 0x206   : > { %p11_p5 = scmp.ge.s32.totalorder %s14_s17, 4   ;;  %s754_s16 = smov %s756_s18 }
 0x208   :  { %13 = sbr.rel (!%p11_p5) target bundleno = 2 (0x2), region = 66 }

</bundles_post_ra>
